<compile_context>
chip_gen: v6e
topology: v6e:2x2x1
jax: 0.10.0
libtpu: 0.0.40
codegen_flags: <defaults>
</compile_context>

<pallas_src>
import functools

import jax
import jax.numpy as jnp
from jax.experimental import pallas as pl
from jax.experimental.pallas import tpu as pltpu


def _round_up(x, m):
    return ((x + m - 1) // m) * m


def _round_down(x, m):
    return (x // m) * m


def _tpu_generation():
    """Best-effort TPU generation sniff: 'v5e' | 'v6e' | 'v7x' | None."""
    try:
        kind = jax.devices()[0].device_kind.lower()
    except Exception:
        return None
    if "v5" in kind:
        return "v5e"
    if "v6" in kind:
        return "v6e"
    if "7" in kind:
        return "v7x"
    return None


def _pick_block_b(B, gen):
    """Batch tile: multiple of 8, chip-aligned, and >=2 grid steps when B allows.

    v5e: 128-row alignment (4x128x128 MXU), v6e: 256/512, v7x: half of v6e
    (64 MiB VMEM; 3.2 TB/s HBM means smaller tiles still hit roofline and the
    extra grid steps feed both TensorCores).
    """
    if B <= 16:
        return B  # single full-array block (exempt from the /8 sublane rule)
    if gen == "v5e":
        align, target = 128, 512
    elif gen == "v7x":
        align, target = 256, 256
    else:  # v6e / unknown
        align, target = 256, 512
    bb = max(8, min(target, _round_down(B // 2, 8)))  # at least two grid steps
    if bb >= align:
        bb = _round_down(bb, align)
    return bb


def _classification_block_kernel(apply_sigmoid,
                                 x_ref,
                                 w1_ref, b1_ref,
                                 w2_ref, b2_ref,
                                 w3_ref, b3_ref,
                                 w4_ref, b4_ref,
                                 o_ref):
    """Fused MLP: matmuls on the MXU with bf16 operands + f32 accumulation;
    bias-add / ReLU / sigmoid in f32 on the VPU / EUP."""
    cdt = w1_ref.dtype  # MXU input dtype (bf16)

    h = jnp.dot(x_ref[...], w1_ref[...], preferred_element_type=jnp.float32) + b1_ref[...]
    h = jnp.maximum(h, 0.0)

    h = jnp.dot(h.astype(cdt), w2_ref[...], preferred_element_type=jnp.float32) + b2_ref[...]
    h = jnp.maximum(h, 0.0)

    h = jnp.dot(h.astype(cdt), w3_ref[...], preferred_element_type=jnp.float32) + b3_ref[...]
    h = jnp.maximum(h, 0.0)

    out = jnp.dot(h.astype(cdt), w4_ref[...], preferred_element_type=jnp.float32) + b4_ref[...]

    if apply_sigmoid:  # static Python flag, baked at trace time
        out = jax.nn.sigmoid(out)  # padded lanes become 0.5; sliced off in the wrapper

    o_ref[...] = out.astype(o_ref.dtype)


def classification_block_forward(x, params, num_categories, *,
                                 block_b=None, compute_dtype=jnp.bfloat16):
    """Pallas forward matching the PyTorch classification_block.

    x:      (B, n_in) float32
    params: dict with w1..w4 in PyTorch layout (out, in) and b1..b4 (out,)
    """
    B, n_in = x.shape
    out_dim = num_categories if num_categories > 2 else 1
    apply_sigmoid = num_categories <= 2
    gen = _tpu_generation()

    # --- batch tiling ((8,128) rule: a partial-batch block must be a multiple of 8) ---
    if block_b is None:
        block_b = _pick_block_b(B, gen)
    else:
        block_b = min(int(block_b), B)
        if block_b < B and block_b % 8 != 0:
            block_b = min(_round_up(block_b, 8), B)
    grid = (pl.cdiv(B, block_b),)

    # --- lane-dense final layer: pad the output width to a multiple of 128 ---
    out_pad = _round_up(out_dim, 128)

    # --- operand prep: (in, out) bf16 weights, bf16 x, f32 (1, out) biases ---
    cdt = jnp.dtype(compute_dtype)
    x_c = x.astype(cdt)
    w1 = params["w1"].T.astype(cdt)
    w2 = params["w2"].T.astype(cdt)
    w3 = params["w3"].T.astype(cdt)
    w4 = jnp.pad(params["w4"].T.astype(cdt), ((0, 0), (0, out_pad - out_dim)))
    b1 = params["b1"].astype(jnp.float32).reshape(1, -1)
    b2 = params["b2"].astype(jnp.float32).reshape(1, -1)
    b3 = params["b3"].astype(jnp.float32).reshape(1, -1)
    b4 = jnp.pad(params["b4"].astype(jnp.float32), (0, out_pad - out_dim)).reshape(1, -1)

    h1, h2, h3 = n_in // 2, n_in // 4, n_in // 8
    # NOTE: hidden widths that are not multiples of 128 get lane-padded on every matmul;
    # for peak MXU efficiency pick n_in so that n_in // 8 is a multiple of 128.

    def resident(arr):
        # Constant index_map -> the same block every grid step, so the weights stay
        # resident in VMEM across the batch loop.
        # TODO(synk): single-buffer these (pipeline_mode=pl.Buffered(1)) once that knob
        # is reliably honored by the top-level TPU pallas_call pipeline; skipped here
        # to guarantee clean lowering (VMEM saving is ~0.66*n_in^2 bytes).
        return pl.BlockSpec(arr.shape, lambda i: (0, 0))

    # --- explicit VMEM budget (v7x: 64 MiB physical; v5e scoped default is only 16 MiB) ---
    wgt_bytes = 2 * sum(int(a.size) * a.dtype.itemsize
                        for a in (w1, w2, w3, w4, b1, b2, b3, b4))   # double-buffered
    io_bytes = 2 * block_b * n_in * cdt.itemsize + 2 * block_b * out_pad * 4
    act_bytes = block_b * (h1 + h2 + h3 + out_pad) * (4 + cdt.itemsize)
    needed = wgt_bytes + io_bytes + act_bytes
    phys_vmem = (64 << 20) if gen == "v7x" else (128 << 20)
    vmem_limit = int(max(32 << 20, min(2 * needed + (4 << 20), phys_vmem * 3 // 4)))

    # --- advisory cost estimate so XLA can overlap surrounding ops with this call ---
    flops = 2 * B * (n_in * h1 + h1 * h2 + h2 * h3 + h3 * out_dim)
    bytes_accessed = (int(x_c.size) * cdt.itemsize
                      + sum(int(a.size) * a.dtype.itemsize
                            for a in (w1, w2, w3, w4, b1, b2, b3, b4))
                      + B * out_pad * 4)
    cost = pl.CostEstimate(flops=flops,
                           transcendentals=B * out_dim if apply_sigmoid else 0,
                           bytes_accessed=bytes_accessed)

    kernel = functools.partial(_classification_block_kernel, apply_sigmoid)

    out_full = pl.pallas_call(
        kernel,
        out_shape=jax.ShapeDtypeStruct((B, out_pad), jnp.float32),
        grid_spec=pltpu.PrefetchScalarGridSpec(
            num_scalar_prefetch=0,
            grid=grid,
            in_specs=[
                pl.BlockSpec((block_b, n_in), lambda i: (i, 0)),   # x tile over batch
                resident(w1), resident(b1),
                resident(w2), resident(b2),
                resident(w3), resident(b3),
                resident(w4), resident(b4),
            ],
            out_specs=pl.BlockSpec((block_b, out_pad), lambda i: (i, 0)),
        ),
        compiler_params=pltpu.CompilerParams(
            dimension_semantics=("parallel",),
            vmem_limit_bytes=vmem_limit),
        cost_estimate=cost,
    )(x_c, w1, b1, w2, b2, w3, b3, w4, b4)

    return out_full[:, :out_dim]


def init_params(key, n_in, num_categories, dtype=jnp.float32):
    """Deterministic init mirroring nn.Linear default: U(-1/sqrt(fan_in), 1/sqrt(fan_in))."""
    dims = [n_in, n_in // 2, n_in // 4, n_in // 8,
            num_categories if num_categories > 2 else 1]
    params = {}
    keys = jax.random.split(key, 8)
    for idx in range(4):
        fan_in, fan_out = dims[idx], dims[idx + 1]
        bound = 1.0 / (fan_in ** 0.5)
        params[f"w{idx+1}"] = jax.random.uniform(
            keys[2 * idx], (fan_out, fan_in), dtype, minval=-bound, maxval=bound)
        params[f"b{idx+1}"] = jax.random.uniform(
            keys[2 * idx + 1], (fan_out,), dtype, minval=-bound, maxval=bound)
    return params


def reference_forward_f32(x, params, num_categories):
    """Pure-f32 reference (PyTorch semantics)."""
    h = jax.nn.relu(x @ params["w1"].T + params["b1"])
    h = jax.nn.relu(h @ params["w2"].T + params["b2"])
    h = jax.nn.relu(h @ params["w3"].T + params["b3"])
    out = h @ params["w4"].T + params["b4"]
    if num_categories <= 2:
        out = jax.nn.sigmoid(out)
    return out


def reference_forward_bf16(x, params, num_categories, compute_dtype=jnp.bfloat16):
    """Reference that emulates the kernel's bf16-operand / f32-accumulate numerics."""
    cdt = jnp.dtype(compute_dtype)
    ws = [params[f"w{i}"].T.astype(cdt) for i in range(1, 5)]
    bs = [params[f"b{i}"].astype(jnp.float32) for i in range(1, 5)]
    h = x.astype(cdt)
    for i in range(3):
        h = jnp.dot(h, ws[i], preferred_element_type=jnp.float32) + bs[i]
        h = jnp.maximum(h, 0.0).astype(cdt)
    out = jnp.dot(h, ws[3], preferred_element_type=jnp.float32) + bs[3]
    if num_categories <= 2:
        out = jax.nn.sigmoid(out)
    return out


if __name__ == "__main__":
    key = jax.random.PRNGKey(0)
    k_x, k_p1, k_p2 = jax.random.split(key, 3)

    B, n_in = 2, 32
    x = jax.random.normal(k_x, (B, n_in), jnp.float32)

    # Multi-class head (num_categories > 2): plain logits out.
    num_categories = 5
    params = init_params(k_p1, n_in, num_categories)
    out = jax.block_until_ready(classification_block_forward(x, params, num_categories))
    assert out.shape == (B, num_categories)
    assert jnp.allclose(out, reference_forward_bf16(x, params, num_categories),
                        atol=1e-4, rtol=1e-4)
    assert jnp.allclose(out, reference_forward_f32(x, params, num_categories),
                        atol=3e-2, rtol=3e-2)

    # Binary head (num_categories <= 2): sigmoid output, width 1.
    num_categories_bin = 2
    params_bin = init_params(k_p2, n_in, num_categories_bin)
    out_bin = jax.block_until_ready(
        classification_block_forward(x, params_bin, num_categories_bin))
    assert out_bin.shape == (B, 1)
    assert jnp.allclose(out_bin, reference_forward_bf16(x, params_bin, num_categories_bin),
                        atol=1e-4, rtol=1e-4)
    assert jnp.allclose(out_bin, reference_forward_f32(x, params_bin, num_categories_bin),
                        atol=3e-2, rtol=3e-2)

    # Exercise the tiled (multi grid-step, pipelined) path on a larger batch.
    B2 = 1024
    x2 = jax.random.normal(k_x, (B2, n_in), jnp.float32)
    out2 = jax.block_until_ready(classification_block_forward(x2, params, num_categories))
    assert out2.shape == (B2, num_categories)
    assert jnp.allclose(out2, reference_forward_bf16(x2, params, num_categories),
                        atol=1e-4, rtol=1e-4)

    print("KERNEL_OK")
</pallas_src>

<mosaic_0001>
module attributes {stable_mosaic.version = 11 : i64} {
  func.func @_classification_block_kernel(%arg0: i32, %arg1: memref<2x32xbf16, #tpu.memory_space<vmem>>, %arg2: memref<32x16xbf16, #tpu.memory_space<vmem>>, %arg3: memref<1x16xf32, #tpu.memory_space<vmem>>, %arg4: memref<16x8xbf16, #tpu.memory_space<vmem>>, %arg5: memref<1x8xf32, #tpu.memory_space<vmem>>, %arg6: memref<8x4xbf16, #tpu.memory_space<vmem>>, %arg7: memref<1x4xf32, #tpu.memory_space<vmem>>, %arg8: memref<4x128xbf16, #tpu.memory_space<vmem>>, %arg9: memref<1x128xf32, #tpu.memory_space<vmem>>, %arg10: memref<2x128xf32, #tpu.memory_space<vmem>>) attributes {dimension_semantics = [#tpu.dimension_semantics<parallel>], iteration_bounds = array<i64: 1>, scalar_prefetch = 0 : i64, scratch_operands = 0 : i64, tpu.core_type = #tpu.core_type<tc>, window_params = [{transform_indices = @transform_0, window_bounds = array<i64: 2, 32>}, {pipeline_mode = #tpu.pipeline_mode<synchronous>, transform_indices = @transform_1, window_bounds = array<i64: 32, 16>}, {pipeline_mode = #tpu.pipeline_mode<synchronous>, transform_indices = @transform_2, window_bounds = array<i64: 1, 16>}, {pipeline_mode = #tpu.pipeline_mode<synchronous>, transform_indices = @transform_3, window_bounds = array<i64: 16, 8>}, {pipeline_mode = #tpu.pipeline_mode<synchronous>, transform_indices = @transform_4, window_bounds = array<i64: 1, 8>}, {pipeline_mode = #tpu.pipeline_mode<synchronous>, transform_indices = @transform_5, window_bounds = array<i64: 8, 4>}, {pipeline_mode = #tpu.pipeline_mode<synchronous>, transform_indices = @transform_6, window_bounds = array<i64: 1, 4>}, {pipeline_mode = #tpu.pipeline_mode<synchronous>, transform_indices = @transform_7, window_bounds = array<i64: 4, 128>}, {pipeline_mode = #tpu.pipeline_mode<synchronous>, transform_indices = @transform_8, window_bounds = array<i64: 1, 128>}, {transform_indices = @transform_9, window_bounds = array<i64: 2, 128>}]} {
    %c0 = arith.constant 0 : index
    %c0_0 = arith.constant 0 : index
    %0 = vector.load %arg1[%c0, %c0_0] : memref<2x32xbf16, #tpu.memory_space<vmem>>, vector<2x32xbf16>
    %c0_1 = arith.constant 0 : index
    %c0_2 = arith.constant 0 : index
    %1 = vector.load %arg2[%c0_1, %c0_2] : memref<32x16xbf16, #tpu.memory_space<vmem>>, vector<32x16xbf16>
    %cst = arith.constant dense<0.000000e+00> : vector<2x16xf32>
    %2 = tpu.matmul %0, %1, %cst {dimension_numbers = #tpu.dot_dimension_numbers<[1], [0], [0], [1], [0, 0, 1, 1], [], []>} : vector<2x32xbf16>, vector<32x16xbf16>, vector<2x16xf32> -> vector<2x16xf32>
    %c0_3 = arith.constant 0 : index
    %c0_4 = arith.constant 0 : index
    %3 = vector.load %arg3[%c0_3, %c0_4] : memref<1x16xf32, #tpu.memory_space<vmem>>, vector<1x16xf32>
    %4 = vector.broadcast %3 : vector<1x16xf32> to vector<2x16xf32>
    %5 = arith.addf %2, %4 : vector<2x16xf32>
    %cst_5 = arith.constant 0.000000e+00 : f32
    %6 = vector.broadcast %cst_5 : f32 to vector<2x16xf32>
    %7 = arith.maximumf %5, %6 : vector<2x16xf32>
    %8 = arith.truncf %7 : vector<2x16xf32> to vector<2x16xbf16>
    %c0_6 = arith.constant 0 : index
    %c0_7 = arith.constant 0 : index
    %9 = vector.load %arg4[%c0_6, %c0_7] : memref<16x8xbf16, #tpu.memory_space<vmem>>, vector<16x8xbf16>
    %cst_8 = arith.constant dense<0.000000e+00> : vector<2x8xf32>
    %10 = tpu.matmul %8, %9, %cst_8 {dimension_numbers = #tpu.dot_dimension_numbers<[1], [0], [0], [1], [0, 0, 1, 1], [], []>} : vector<2x16xbf16>, vector<16x8xbf16>, vector<2x8xf32> -> vector<2x8xf32>
    %c0_9 = arith.constant 0 : index
    %c0_10 = arith.constant 0 : index
    %11 = vector.load %arg5[%c0_9, %c0_10] : memref<1x8xf32, #tpu.memory_space<vmem>>, vector<1x8xf32>
    %12 = vector.broadcast %11 : vector<1x8xf32> to vector<2x8xf32>
    %13 = arith.addf %10, %12 : vector<2x8xf32>
    %cst_11 = arith.constant 0.000000e+00 : f32
    %14 = vector.broadcast %cst_11 : f32 to vector<2x8xf32>
    %15 = arith.maximumf %13, %14 : vector<2x8xf32>
    %16 = arith.truncf %15 : vector<2x8xf32> to vector<2x8xbf16>
    %c0_12 = arith.constant 0 : index
    %c0_13 = arith.constant 0 : index
    %17 = vector.load %arg6[%c0_12, %c0_13] : memref<8x4xbf16, #tpu.memory_space<vmem>>, vector<8x4xbf16>
    %cst_14 = arith.constant dense<0.000000e+00> : vector<2x4xf32>
    %18 = tpu.matmul %16, %17, %cst_14 {dimension_numbers = #tpu.dot_dimension_numbers<[1], [0], [0], [1], [0, 0, 1, 1], [], []>} : vector<2x8xbf16>, vector<8x4xbf16>, vector<2x4xf32> -> vector<2x4xf32>
    %c0_15 = arith.constant 0 : index
    %c0_16 = arith.constant 0 : index
    %19 = vector.load %arg7[%c0_15, %c0_16] : memref<1x4xf32, #tpu.memory_space<vmem>>, vector<1x4xf32>
    %20 = vector.broadcast %19 : vector<1x4xf32> to vector<2x4xf32>
    %21 = arith.addf %18, %20 : vector<2x4xf32>
    %cst_17 = arith.constant 0.000000e+00 : f32
    %22 = vector.broadcast %cst_17 : f32 to vector<2x4xf32>
    %23 = arith.maximumf %21, %22 : vector<2x4xf32>
    %24 = arith.truncf %23 : vector<2x4xf32> to vector<2x4xbf16>
    %c0_18 = arith.constant 0 : index
    %c0_19 = arith.constant 0 : index
    %25 = vector.load %arg8[%c0_18, %c0_19] : memref<4x128xbf16, #tpu.memory_space<vmem>>, vector<4x128xbf16>
    %cst_20 = arith.constant dense<0.000000e+00> : vector<2x128xf32>
    %26 = tpu.matmul %24, %25, %cst_20 {dimension_numbers = #tpu.dot_dimension_numbers<[1], [0], [0], [1], [0, 0, 1, 1], [], []>} : vector<2x4xbf16>, vector<4x128xbf16>, vector<2x128xf32> -> vector<2x128xf32>
    %c0_21 = arith.constant 0 : index
    %c0_22 = arith.constant 0 : index
    %27 = vector.load %arg9[%c0_21, %c0_22] : memref<1x128xf32, #tpu.memory_space<vmem>>, vector<1x128xf32>
    %28 = vector.broadcast %27 : vector<1x128xf32> to vector<2x128xf32>
    %29 = arith.addf %26, %28 : vector<2x128xf32>
    %c0_23 = arith.constant 0 : index
    %c0_24 = arith.constant 0 : index
    %30 = vector.load %arg10[%c0_23, %c0_24] : memref<2x128xf32, #tpu.memory_space<vmem>>, vector<2x128xf32>
    tpu.vector_store %arg10[%c0_23, %c0_24], %29 {strides = array<i32>} : memref<2x128xf32, #tpu.memory_space<vmem>>, vector<2x128xf32>,
    return
  }
  func.func @transform_0(%arg0: i32) -> (i32, i32) {
    %c0_i32 = arith.constant 0 : i32
    %c0_i32_0 = arith.constant 0 : i32
    return %arg0, %c0_i32 : i32, i32
  }
  func.func @transform_1(%arg0: i32) -> (i32, i32) {
    %c0_i32 = arith.constant 0 : i32
    %c0_i32_0 = arith.constant 0 : i32
    %c0_i32_1 = arith.constant 0 : i32
    return %c0_i32, %c0_i32_0 : i32, i32
  }
  func.func @transform_2(%arg0: i32) -> (i32, i32) {
    %c0_i32 = arith.constant 0 : i32
    %c0_i32_0 = arith.constant 0 : i32
    %c0_i32_1 = arith.constant 0 : i32
    return %c0_i32, %c0_i32_0 : i32, i32
  }
  func.func @transform_3(%arg0: i32) -> (i32, i32) {
    %c0_i32 = arith.constant 0 : i32
    %c0_i32_0 = arith.constant 0 : i32
    %c0_i32_1 = arith.constant 0 : i32
    return %c0_i32, %c0_i32_0 : i32, i32
  }
  func.func @transform_4(%arg0: i32) -> (i32, i32) {
    %c0_i32 = arith.constant 0 : i32
    %c0_i32_0 = arith.constant 0 : i32
    %c0_i32_1 = arith.constant 0 : i32
    return %c0_i32, %c0_i32_0 : i32, i32
  }
  func.func @transform_5(%arg0: i32) -> (i32, i32) {
    %c0_i32 = arith.constant 0 : i32
    %c0_i32_0 = arith.constant 0 : i32
    %c0_i32_1 = arith.constant 0 : i32
    return %c0_i32, %c0_i32_0 : i32, i32
  }
  func.func @transform_6(%arg0: i32) -> (i32, i32) {
    %c0_i32 = arith.constant 0 : i32
    %c0_i32_0 = arith.constant 0 : i32
    %c0_i32_1 = arith.constant 0 : i32
    return %c0_i32, %c0_i32_0 : i32, i32
  }
  func.func @transform_7(%arg0: i32) -> (i32, i32) {
    %c0_i32 = arith.constant 0 : i32
    %c0_i32_0 = arith.constant 0 : i32
    %c0_i32_1 = arith.constant 0 : i32
    return %c0_i32, %c0_i32_0 : i32, i32
  }
  func.func @transform_8(%arg0: i32) -> (i32, i32) {
    %c0_i32 = arith.constant 0 : i32
    %c0_i32_0 = arith.constant 0 : i32
    %c0_i32_1 = arith.constant 0 : i32
    return %c0_i32, %c0_i32_0 : i32, i32
  }
  func.func @transform_9(%arg0: i32) -> (i32, i32) {
    %c0_i32 = arith.constant 0 : i32
    %c0_i32_0 = arith.constant 0 : i32
    return %arg0, %c0_i32 : i32, i32
  }
}

</mosaic_0001>

<bundles_post_ra>
// kernel: tpu_custom_call.1
= control target key start
LH: loop header
LB: loop body
LE: loop exit
PB: predicated region body
PF: predicated region fallthrough
CT: control target
= control target key end

     0   :  { %v368_v1 = vmov 0.0   ;;  %vm369_vm0 = vmmov 0   ;;  %s458_s0 = inlined_call_operand.vmem [shape: bf16[2,32], index: 0, kind: input, shape index: {}]   ;;  %s459_s1 = inlined_call_operand.vmem [shape: bf16[32,16], index: 1, kind: input, shape index: {}]   ;;  %s460_s2 = inlined_call_operand.vmem [shape: f32[1,16], index: 2, kind: input, shape index: {}]   ;;  %s461_s3 = inlined_call_operand.vmem [shape: bf16[16,8], index: 3, kind: input, shape index: {}]   ;;  %s462_s4 = inlined_call_operand.vmem [shape: f32[1,8], index: 4, kind: input, shape index: {}]   ;;  %s463_s5 = inlined_call_operand.vmem [shape: bf16[8,4], index: 5, kind: input, shape index: {}]   ;;  %s464_s6 = inlined_call_operand.vmem [shape: f32[1,4], index: 6, kind: input, shape index: {}]   ;;  %s465_s7 = inlined_call_operand.vmem [shape: bf16[4,128], index: 7, kind: input, shape index: {}]   ;;  %s466_s8 = inlined_call_operand.vmem [shape: f32[1,128], index: 8, kind: input, shape index: {}]   ;;  %s467_s9 = inlined_call_operand.hbm [shape: f32[2,128], index: 9, kind: output, shape index: {}]  }
   0x1   :  { %v343_v0 = vld [vmem:[%s459_s1 + $0x8] sm:$0xff]   ;;  %314 = vmatprep.subr.bf16.mxu0 %v368_v1  ;;  %322 = vmatprep.subr.bf16.mxu1 %v368_v1  ;;  %v344_v2 = vld [vmem:[%s459_s1] sm:$0xff]  }
   0x2   :  { %315 = vmatpush3.bf16.msra.mxu0 %v343_v0  ;;  %318 = vmatprep.mubr.msk.bf16.mxu0 %vm369_vm0, %v368_v1 }
   0x3   :  { %316 = vmatprep.subr.bf16.mxu0 %v368_v1  ;;  %324 = vmatprep.mubr.msk.bf16.mxu1 %vm369_vm0, %v368_v1 }
   0x4   :  { %14 = vsyncpa [#allocation3], 0  ;;  %v34_v3 = vld [vmem:[%s458_s0] sm:$0x1]  ;;  %vm58_vm1 = vcmask 261120   ;;  %vm177_vm2 = vcmask 1043456  }
   0x5   :  { %v345_v4 = vld [vmem:[%s461_s3] sm:$0xff]   ;;  %vm119_vm3 = vcmask 130048   ;;  %vm235_vm4 = vcmask 1041408   ;;  %vm173_vm5 = vcmask 64512   ;;  %vm231_vm6 = vcmask 31744   ;;  %s370_s22 = smov [#allocation2]  }
   0x6   :  { %317 = vmatpush3.bf16.msra.mxu0 %v344_v2  ;;  %323 = vmatpush3.bf16.msra.mxu1 %v345_v4  ;;  %v294_v5 = vld [vmem:[%s460_s2] ss:$0 sm:$0xff]  ;;  %s286_s23 = sshll.u32 %s370_s22, 4  ;;  %s287_s23 = int_to_ptr.vmem [resolvable:$true] %s286_s23 }
   0x7   :  { %334 = vmatprep.subr.bf16.mxu0 %v368_v1  ;;  %328 = vmatprep.subr.bf16.mxu1 %v368_v1  ;;  %v165_v9 = vld [vmem:[%s463_s5] sm:$0xf]  ;;  %p351_p1 = scmp.lt.s32.totalorder %s287_s23, %s287_s23 }
   0x8   :  { %v179_v13 = vsel %vm177_vm2, %v165_v9, 0  ;;  %v223_v15 = vld [vmem:[%s465_s7] sm:$0x3] }
   0x9   :  { %319 = vmatmul.mubr.msk.bf16.vlgmr.msra.gmra.mxu0 %vm58_vm1, %v34_v3  ;;  %v237_v16 = vsel %vm235_vm4, %v223_v15, 0  ;;  %v298_v17 = vld [vmem:[%s462_s4] ss:$0 sm:$0xff] }
   0xa   :  { %336 = vmatprep.mubr.msk.bf16.mxu0 %vm369_vm0, %v368_v1  ;;  %335 = vmatpush3.bf16.msra.mxu0 %v237_v16  ;;  %v301_v25 = vld [vmem:[%s464_s6] ss:$0 sm:$0xff]  ;;  %s346_s6 = scalar_lea.vmem %s287_s23, 32 }
   0xb   :  { %v303_v33 = vld [vmem:[%s466_s8] ss:$0 sm:$0xff]  ;;  %p347_p0 = scmp.ne.s32.totalorder %s287_s23, %s346_s6  ;;  %p352_p2 = scmp.lt.s32.totalorder %s346_s6, %s346_s6 }
   0xd   :  { %p353_p3 = por %p352_p2, %p351_p1 }
   0xf   :  { %p354_p4 = pnand %p353_p3, %p347_p0 }
  0xc9   :  { %v96_v6 = vpop.f32.mrf.mxu0 }
  0xca   :  { %v97_v7 = vadd.f32 %v294_v5, %v96_v6 }
  0xcb   :  { %v320_v8 = vpop.f32.mrf.mxu0 }
  0xcc   :  { %v102_v10 = vmax.f32 %v97_v7, 0.0 }
  0xcd   :  { %v99_v11 = vpop.f32.mrf.mxu0 }
  0xce   :  { %v103_v12 = vpack.c.bf16 %v102_v10, %v102_v10 }
  0xcf   :  { %v321_v14 = vpop.f32.mrf.mxu0 }
  0xd0   :  { %325 = vmatmul.mubr.msk.bf16.vlgmr.msra.gmra.mxu1 %vm119_vm3, %v103_v12 }
  0xd1   :  { %329 = vmatpush3.bf16.msra.mxu1 %v179_v13  ;;  %330 = vmatprep.mubr.msk.bf16.mxu1 %vm369_vm0, %v368_v1 }
 0x190   :  { %v157_v18 = vpop.f32.mrf.mxu1 }
 0x191   :  { %v158_v19 = vadd.f32 %v298_v17, %v157_v18 }
 0x192   :  { %v326_v20 = vpop.f32.mrf.mxu1 }
 0x193   :  { %v163_v21 = vmax.f32 %v158_v19, 0.0 }
 0x194   :  { %v160_v22 = vpop.f32.mrf.mxu1 }
 0x195   :  { %v164_v23 = vpack.c.bf16 %v163_v21, %v163_v21 }
 0x196   :  { %v327_v24 = vpop.f32.mrf.mxu1 }
 0x197   :  { %331 = vmatmul.mubr.msk.bf16.vlgmr.msra.gmra.mxu1 %vm173_vm5, %v164_v23 }
 0x257   :  { %v215_v26 = vpop.f32.mrf.mxu1 }
 0x258   :  { %v216_v27 = vadd.f32 %v301_v25, %v215_v26 }
 0x259   :  { %v332_v28 = vpop.f32.mrf.mxu1 }
 0x25a   :  { %v221_v29 = vmax.f32 %v216_v27, 0.0 }
 0x25b   :  { %v218_v30 = vpop.f32.mrf.mxu1 }
 0x25c   :  { %v222_v31 = vpack.c.bf16 %v221_v29, %v221_v29 }
 0x25d   :  { %v333_v32 = vpop.f32.mrf.mxu1 }
 0x25e   :  { %337 = vmatmul.mubr.msk.bf16.vlgmr.msra.gmra.mxu0 %vm231_vm6, %v222_v31 }
 0x31e   :  { %v273_v34 = vpop.f32.mrf.mxu0 }
 0x31f   :  { %v274_v35 = vadd.f32 %v303_v33, %v273_v34 }
 0x320   :  { %v338_v36 = vpop.f32.mrf.mxu0 }
 0x321   :  { %279 = vst [vmem:[#allocation2] sm:$0x3] %v274_v35 }
 0x322   :  { %v276_v37 = vpop.f32.mrf.mxu0 }
 0x323   :  { %357 = shalt.err (!%p354_p4)
}
 0x324   :  { %289 = dma.vmem_to_hbm [thread:$0]  %s287_s23, 32, %s467_s9, [#allocation3]   ;;  %v339_v38 = vpop.f32.mrf.mxu0 }
 0x325   :  { %366 = dma.done.wait [#allocation3], 32  }
 0x326   :  { %367 = vsyncadd [#allocation3], 4294967264 }
 0x327   :  { %293 = vsyncpa [#allocation3], 1 }

</bundles_post_ra>
